<compile_context>
chip_gen: v7x
topology: tpu7x:2x2x1
jax: 0.10.0
libtpu: 0.0.40
codegen_flags: <defaults>
</compile_context>

<pallas_src>
import functools

import jax
import jax.numpy as jnp
import numpy as np
from jax import lax
from jax.experimental import pallas as pl
from jax.experimental.pallas import tpu as pltpu

LANE = 128


def _mapper_kernel(h_ref, table_ref, out_ref, *, k_plus_1):
    # h_ref     : (TB, P)    int32  raw per-part k-ids for this batch tile
    # table_ref : (V, P*D)   f32    block-diagonal fused table (VMEM-resident)
    # out_ref   : (TB, P*D)  f32    lane-dense output slab
    TB, P = h_ref.shape
    V, PD = table_ref.shape

    # id[b, p] = hash[b, p] + p * (K + 1)   (int VPU, essentially free)
    part_iota = lax.broadcasted_iota(jnp.int32, (TB, P), 1)
    ids = h_ref[...] + part_iota * k_plus_1                          # (TB, P)

    # Multi-hot over the vocab: exactly one 1 per part (valid hashes).  Parts
    # occupy disjoint row ranges, so each selected row only contributes to its
    # own lane block of the block-diagonal table.  Exact for 0/1 values.
    vocab_iota = lax.broadcasted_iota(jnp.int32, (TB, P, V), 2)
    multihot = jnp.sum(
        (ids[:, :, None] == vocab_iota).astype(table_ref.dtype), axis=1)  # (TB, V)

    # Single MXU push per tile: (TB, V) @ (V, P*D) -> (TB, P*D).
    out_ref[...] = jnp.dot(
        multihot, table_ref[...],
        preferred_element_type=jnp.float32).astype(out_ref.dtype)


def prepare_partcraft_mapper_params(emb_table, pe, w, b,
                                    num_parts, num_k_per_part):
    """Static parameter prep — run ONCE per weight update, not per forward.

    Folds the single Linear, the positional embedding and the bias into one
    block-diagonal table of shape (V, num_parts * out_dims):
        row p*(K+1)+k, columns [p*D, (p+1)*D)  =  (E @ W)[row] + (pe @ W)[p] + b
    (`w` is the projection weight already transposed so y = x @ w + b.)
    """
    V, D = emb_table.shape
    P = num_parts
    K1 = num_k_per_part + 1
    assert V == K1 * P
    e_w = jnp.dot(emb_table, w, precision=lax.Precision.HIGHEST)          # (V, D)
    pe_w = jnp.dot(pe, w, precision=lax.Precision.HIGHEST) + b[None, :]   # (P, D)
    fused = e_w.reshape(P, K1, D) + pe_w[:, None, :]                      # (P, K1, D)
    eye = jnp.eye(P, dtype=fused.dtype)
    table = jnp.einsum("pkd,pq->pkqd", fused, eye).reshape(V, P * D)      # block-diag
    return table


def partcraft_token_mapper_forward(hashes, packed_table,
                                   num_parts, num_k_per_part, out_dims,
                                   *, batch_tile=None,
                                   out_dtype=jnp.float32):
    """hashes: (B, num_parts) int of per-part k-ids.  Returns (B, P, out_dims).

    `packed_table` comes from prepare_partcraft_mapper_params (hoisted prep).
    Pass out_dtype=jnp.bfloat16 to halve the (writeback-bound) HBM traffic if
    downstream tolerates it.
    """
    B, P = hashes.shape
    assert P == num_parts
    V, PD = packed_table.shape
    D = out_dims
    assert PD == P * D

    # Batch tiling: large tiles amortize the ~0.35 us per-grid-step overhead
    # and feed full MXU row tiles; keep >= 2 grid steps for large batches so
    # the "parallel" batch axis can shard across v7x's two TensorCores.
    if batch_tile is None:
        if B <= 512:
            batch_tile = B
        else:
            batch_tile = 512
            for cand in (1024, 768, 512, 256):
                if B % cand == 0 and B // cand >= 2:
                    batch_tile = cand
                    break
    TB = batch_tile

    # Pad the batch so every block (input and output) is full.
    Bp = pl.cdiv(B, TB) * TB
    h = hashes.astype(jnp.int32)
    if Bp != B:
        h = jnp.pad(h, ((0, Bp - B), (0, 0)))
    grid = (Bp // TB,)

    kernel = functools.partial(_mapper_kernel, k_plus_1=num_k_per_part + 1)

    out2d = pl.pallas_call(
        kernel,
        out_shape=jax.ShapeDtypeStruct((Bp, PD), out_dtype),
        grid_spec=pltpu.PrefetchScalarGridSpec(
            num_scalar_prefetch=0,
            grid=grid,
            in_specs=[
                pl.BlockSpec((TB, P), lambda i: (i, 0)),   # hashes (batch-tiled)
                pl.BlockSpec((V, PD), lambda i: (0, 0)),   # fused table (resident)
            ],
            out_specs=pl.BlockSpec((TB, PD), lambda i: (i, 0)),
        ),
        compiler_params=pltpu.CompilerParams(
            dimension_semantics=("parallel",)),
    )(h, packed_table)

    if Bp != B:
        out2d = out2d[:B]
    return out2d.reshape(B, P, D)     # contiguous reshape: metadata only


def _reference_forward(hashes, emb_table, pe, w, b, num_parts, num_k_per_part):
    """Pure-JAX reference mirroring the PyTorch module (index=None path)."""
    B, P = hashes.shape
    offset = jnp.arange(P, dtype=jnp.int32) * (num_k_per_part + 1)
    ids = hashes.astype(jnp.int32) + offset[None, :]
    emb = emb_table[ids]                                   # (B, P, D)
    x = emb + pe[None, :, :]
    return (jnp.einsum("bpd,de->bpe", x, w, precision=lax.Precision.HIGHEST)
            + b[None, None, :])


if __name__ == "__main__":
    # Small config consistent with the module.
    num_parts = 8
    num_k_per_part = 4
    out_dims = 32
    batch = 2
    vocab = (num_k_per_part + 1) * num_parts   # 40

    key = jax.random.PRNGKey(0)
    k_emb, k_pe, k_w, k_b, k_hash = jax.random.split(key, 5)

    # Deterministic synthetic parameters (shapes match the torch module).
    emb_table = jax.random.normal(k_emb, (vocab, out_dims), dtype=jnp.float32)
    pe = jax.random.normal(k_pe, (num_parts, out_dims), dtype=jnp.float32)
    # nn.Linear(out_dims, out_dims): store W already transposed so y = x @ W + b
    w = (jax.random.normal(k_w, (out_dims, out_dims), dtype=jnp.float32)
         / jnp.sqrt(out_dims))
    b = jax.random.normal(k_b, (out_dims,), dtype=jnp.float32) * 0.01

    # Input: per-part k ids in [0, num_k_per_part]  (B, num_parts)
    hashes = jax.random.randint(
        k_hash, (batch, num_parts), 0, num_k_per_part + 1, dtype=jnp.int32)

    # Static prep: once per weight update (hoisted out of the forward path).
    packed_table = jax.block_until_ready(
        prepare_partcraft_mapper_params(
            emb_table, pe, w, b, num_parts, num_k_per_part))

    out = partcraft_token_mapper_forward(
        hashes, packed_table, num_parts, num_k_per_part, out_dims)
    out = jax.block_until_ready(out)

    ref = _reference_forward(
        hashes, emb_table, pe, w, b, num_parts, num_k_per_part)
    ref = jax.block_until_ready(ref)

    assert out.shape == (batch, num_parts, out_dims)
    np.testing.assert_allclose(np.asarray(out), np.asarray(ref),
                               rtol=1e-4, atol=1e-4)

    print("KERNEL_OK")
</pallas_src>

<mosaic_0001>
module attributes {stable_mosaic.version = 11 : i64} {
  func.func @_mapper_kernel(%arg0: i32, %arg1: memref<2x8xi32, #tpu.memory_space<vmem>>, %arg2: memref<40x256xf32, #tpu.memory_space<vmem>>, %arg3: memref<2x256xf32, #tpu.memory_space<vmem>>) attributes {dimension_semantics = [#tpu.dimension_semantics<parallel>], iteration_bounds = array<i64: 1>, scalar_prefetch = 0 : i64, scratch_operands = 0 : i64, tpu.core_type = #tpu.core_type<tc>, window_params = [{transform_indices = @transform_0, window_bounds = array<i64: 2, 8>}, {pipeline_mode = #tpu.pipeline_mode<synchronous>, transform_indices = @transform_1, window_bounds = array<i64: 40, 256>}, {transform_indices = @transform_2, window_bounds = array<i64: 2, 256>}]} {
    %0 = tpu.iota {dimensions = array<i32: 1>} : vector<2x8xi32>
    %c0 = arith.constant 0 : index
    %c0_0 = arith.constant 0 : index
    %1 = vector.load %arg1[%c0, %c0_0] : memref<2x8xi32, #tpu.memory_space<vmem>>, vector<2x8xi32>
    %c5_i32 = arith.constant 5 : i32
    %2 = vector.broadcast %c5_i32 : i32 to vector<2x8xi32>
    %3 = arith.muli %0, %2 : vector<2x8xi32>
    %4 = arith.addi %1, %3 : vector<2x8xi32>
    %5 = tpu.iota {dimensions = array<i32: 2>} : vector<2x8x40xi32>
    %6 = vector.shape_cast %4 : vector<2x8xi32> to vector<2x8x1xi32>
    %7 = vector.broadcast %6 : vector<2x8x1xi32> to vector<2x8x40xi32>
    %8 = arith.cmpi eq, %7, %5 : vector<2x8x40xi32>
    %9 = arith.extui %8 : vector<2x8x40xi1> to vector<2x8x40xi32>
    %10 = arith.sitofp %9 : vector<2x8x40xi32> to vector<2x8x40xf32>
    %cst = arith.constant dense<0.000000e+00> : vector<2x40xf32>
    %11 = vector.multi_reduction <add>, %10, %cst [1] : vector<2x8x40xf32> to vector<2x40xf32>
    %c0_1 = arith.constant 0 : index
    %c0_2 = arith.constant 0 : index
    %12 = vector.load %arg2[%c0_1, %c0_2] : memref<40x256xf32, #tpu.memory_space<vmem>>, vector<40x256xf32>
    %cst_3 = arith.constant dense<0.000000e+00> : vector<2x256xf32>
    %13 = tpu.matmul %11, %12, %cst_3 {dimension_numbers = #tpu.dot_dimension_numbers<[1], [0], [0], [1], [0, 0, 1, 1], [], []>} : vector<2x40xf32>, vector<40x256xf32>, vector<2x256xf32> -> vector<2x256xf32>
    %c0_4 = arith.constant 0 : index
    %c0_5 = arith.constant 0 : index
    %14 = vector.load %arg3[%c0_4, %c0_5] : memref<2x256xf32, #tpu.memory_space<vmem>>, vector<2x256xf32>
    tpu.vector_store %arg3[%c0_4, %c0_5], %13 {strides = array<i32>} : memref<2x256xf32, #tpu.memory_space<vmem>>, vector<2x256xf32>,
    return
  }
  func.func @transform_0(%arg0: i32) -> (i32, i32) {
    %c0_i32 = arith.constant 0 : i32
    %c0_i32_0 = arith.constant 0 : i32
    return %arg0, %c0_i32 : i32, i32
  }
  func.func @transform_1(%arg0: i32) -> (i32, i32) {
    %c0_i32 = arith.constant 0 : i32
    %c0_i32_0 = arith.constant 0 : i32
    %c0_i32_1 = arith.constant 0 : i32
    return %c0_i32, %c0_i32_0 : i32, i32
  }
  func.func @transform_2(%arg0: i32) -> (i32, i32) {
    %c0_i32 = arith.constant 0 : i32
    %c0_i32_0 = arith.constant 0 : i32
    return %arg0, %c0_i32 : i32, i32
  }
}

</mosaic_0001>

<bundles_post_ra>
// kernel: tpu_custom_call.1
= control target key start
LH: loop header
LB: loop body
LE: loop exit
PB: predicated region body
PF: predicated region fallthrough
CT: control target
= control target key end

     0   :  { %7 = vsyncpa [#allocation3], 0  ;;  %s350_s0 = inlined_call_operand.hbm [shape: s32[2,8], index: 0, kind: input, shape index: {}]   ;;  %s351_s1 = inlined_call_operand.hbm [shape: f32[40,256], index: 1, kind: input, shape index: {}]   ;;  %s352_s2 = inlined_call_operand.hbm [shape: f32[2,256], index: 2, kind: output, shape index: {}]  }
   0x1   :  { %8 = vsyncpa [#allocation6], 0 }
   0x2   :  { %9 = vsyncpa [#allocation4], 0  ;;  %s283_s9 = smov [#allocation2]   ;;  %s284_s11 = smov [#allocation5]  }
   0x3   :  { %s16_s10 = sshll.u32 %s283_s9, 4  ;;  %s25_s12 = sshll.u32 %s284_s11, 4  ;;  %s17_s10 = int_to_ptr.vmem [resolvable:$true] %s16_s10  ;;  %s304_s12 = int_to_ptr.vmem [resolvable:$true] %s25_s12 }
   0x4   :  { %s211_s15 = scalar_lea.hbm %s350_s0, 32 }
   0x5   :  { %p212_p0 = scmp.ne.s32.totalorder %s350_s0, %s211_s15  ;;  %p215_p1 = scmp.lt.u32.totalorder %s211_s15, %s350_s0 }
   0x7   :  { %p217_p2 = pnand %p215_p1, %p212_p0 }
   0x9   :  { %220 = shalt.err (!%p217_p2)
}
   0xa   :  { %s221_s20 = scalar_lea.vmem %s17_s10, 32  ;;  %p226_p4 = scmp.lt.s32.totalorder %s17_s10, %s17_s10 }
   0xb   :  { %p222_p3 = scmp.ne.s32.totalorder %s17_s10, %s221_s20  ;;  %p227_p5 = scmp.lt.s32.totalorder %s221_s20, %s221_s20 }
   0xd   :  { %p228_p6 = por %p227_p5, %p226_p4 }
   0xf   :  { %p229_p7 = pnand %p228_p6, %p222_p3 }
  0x11   :  { %232 = shalt.err (!%p229_p7)
}
  0x12   :  { %19 = dma.hbm_to_vmem [thread:$0]  %s350_s0, 32, %s17_s10, [#allocation3]  }
  0x13   :  { %s233_s25 = scalar_lea.hbm %s351_s1, 1280 }
  0x14   :  { %p234_p8 = scmp.ne.s32.totalorder %s351_s1, %s233_s25  ;;  %p237_p9 = scmp.lt.u32.totalorder %s233_s25, %s351_s1 }
  0x16   :  { %p239_p10 = pnand %p237_p9, %p234_p8 }
  0x18   :  { %242 = shalt.err (!%p239_p10)
}
  0x19   :  { %s243_s30 = scalar_lea.vmem %s304_s12, 1280  ;;  %p248_p12 = scmp.lt.s32.totalorder %s304_s12, %s304_s12 }
  0x1a   :  { %p244_p11 = scmp.ne.s32.totalorder %s304_s12, %s243_s30  ;;  %p249_p13 = scmp.lt.s32.totalorder %s243_s30, %s243_s30 }
  0x1c   :  { %p250_p0 = por %p249_p13, %p248_p12 }
  0x1e   :  { %p251_p1 = pnand %p250_p0, %p244_p11 }
  0x20   :  { %254 = shalt.err (!%p251_p1)
}
  0x21   :  { %s285_s0 = smov 256   ;;  %s286_s3 = smov 16  }
  0x22   :  { %31 = dma.hbm_to_vmem [thread:$0]  %s351_s1, 1280, %s304_s12, [#allocation6], %s285_s0, %s285_s0, %s286_s3  }
  0x23   :  { %277 = dma.done.wait [#allocation3], 32  }
  0x24   :  { %278 = vsyncadd [#allocation3], 4294967264 }
  0x25   :  { %279 = dma.done.wait [#allocation6], 1280  }
  0x26   :  { %280 = vsyncadd [#allocation6], 4294966016  ;;  %v38_v0 = vlaneseq  ;;  %v287_v1 = vmov 0.0   ;;  %v40_v6 = vld [vmem:[#allocation2] sm:$0x3]  ;;  %v79_v7 = vld [vmem:[#allocation5 + $0x8] sm:$0xff] }
  0x27   :  { %158 = vmatprep.mubr.f32.mxu0 %v287_v1  ;;  %v81_v8 = vld [vmem:[#allocation5 + $0x18] sm:$0xff]  ;;  %v78_v12 = vld [vmem:[#allocation5] sm:$0xff]  ;;  %v80_v13 = vld [vmem:[#allocation5 + $0x10] sm:$0xff]  ;;  %vm63_vm0 = vcmask 326656   ;;  %vm90_vm3 = vcmask 1041409   ;;  %s288_s1 = smov [#allocation7]  }
  0x28   :  { %v39_v2 = vand.u32 127, %v38_v0  ;;  %v44_v3 = vshrl.u32 %v38_v0, 7  ;;  %v197_v11 = vpack.c.bf16 %v81_v8, %v79_v7  ;;  %v199_v14 = vpack.c.bf16 %v80_v13, %v78_v12  ;;  %v83_v16 = vld [vmem:[#allocation5 + $0x28] sm:$0xff]  ;;  %v85_v17 = vld [vmem:[#allocation5 + $0x38] sm:$0xff]  ;;  %v82_v19 = vld [vmem:[#allocation5 + $0x20] sm:$0xff]  ;;  %s183_s6 = sshll.u32 %s288_s1, 4  ;;  %s184_s6 = int_to_ptr.vmem [resolvable:$true] %s183_s6 }
  0x29   :  { %v201_v18 = vpack.c.bf16 %v85_v17, %v83_v16  ;;  %v84_v20 = vld [vmem:[#allocation5 + $0x30] sm:$0xff]  ;;  %v87_v23 = vld [vmem:[#allocation5 + $0x48] sm:$0xff]  ;;  %v86_v24 = vld [vmem:[#allocation5 + $0x40] sm:$0xff]  ;;  %s255_s7 = scalar_lea.vmem %s184_s6, 64  ;;  %p260_p3 = scmp.lt.s32.totalorder %s184_s6, %s184_s6 }
  0x2a   :  { %v41_v4 = vmul.u32 5, %v39_v2  ;;  %v45_v5 = vsub.s32 0, %v44_v3  ;;  %v52_v10 = vsub.s32 1, %v44_v3  ;;  %198 = vmatprep.subr.bf16.mxu0 %v197_v11  ;;  %v203_v22 = vpack.c.bf16 %v84_v20, %v82_v19  ;;  %p256_p2 = scmp.ne.s32.totalorder %s184_s6, %s255_s7  ;;  %p261_p4 = scmp.lt.s32.totalorder %s255_s7, %s255_s7 }
  0x2b   :  { %200 = vmatpush1.bf16.msra.mxu0 %v199_v14 }
  0x2c   :  { %v42_v9 = vadd.s32 %v41_v4, %v40_v6  ;;  %202 = vmatprep.subr.bf16.mxu0 %v201_v18  ;;  %p262_p5 = por %p261_p4, %p260_p3 }
  0x2e   :  { %v46_v15 = vrot.slane %v42_v9, %v45_v5  ;;  %v53_v21 = vrot.slane %v42_v9, %v52_v10  ;;  %p263_p6 = pnand %p262_p5, %p256_p2 }
  0x2f   :  { %204 = vmatpush1.bf16.msra.mxu0 %v203_v22 }
  0x30   :  { %48 = vbcast.lane.b32.xlu0 %v46_v15, 256  ;;  %102 = vmatprep.subr.mxu0 %v87_v23 }
  0x33   :  { %103 = vmatpush1.msra.mxu0 %v86_v24 }
  0x34   :  { %55 = vbcast.lane.b32.xlu0 %v53_v21, 256 }
  0xa2   :  { %v49_v25 = vpop.permute.xlu0 %48 }
  0xa3   :  { %vm57_vm1 = vcmp.eq.s32.totalorder %v49_v25, %v39_v2 }
  0xa4   :  { %v193_v26 = vsel %vm57_vm1, 1.0, %v287_v1 }
  0xa5   :  { %v64_v27 = vsel %vm63_vm0, %v193_v26, 0.0 }
  0xa6   :  { %v65_v28 = vrot.slane %v64_v27, 4  ;;  %v56_v29 = vpop.permute.xlu0 %55 }
  0xa7   :  { %vm58_vm2 = vcmp.eq.s32.totalorder %v56_v29, %v39_v2 }
  0xa8   :  { %v66_v30 = vadd.f32 %v65_v28, %v64_v27  ;;  %v194_v31 = vsel %vm58_vm2, 1.0, %v287_v1 }
  0xa9   :  { %v71_v32 = vsel %vm63_vm0, %v194_v31, 0.0 }
  0xaa   :  { %v67_v33 = vrot.slane %v66_v30, 2  ;;  %v72_v34 = vrot.slane %v71_v32, 4 }
  0xac   :  { %v68_v35 = vadd.f32 %v67_v33, %v66_v30  ;;  %v73_v36 = vadd.f32 %v72_v34, %v71_v32 }
  0xae   :  { %v74_v37 = vrot.slane %v73_v36, 2  ;;  %v69_v38 = vrot.slane %v68_v35, 1 }
  0xb0   :  { %v75_v39 = vadd.f32 %v74_v37, %v73_v36  ;;  %v70_v41 = vadd.f32 %v69_v38, %v68_v35 }
  0xb2   :  { %v76_v40 = vrot.slane %v75_v39, 1 }
  0xb4   :  { %v77_v42 = vadd.f32 %v76_v40, %v75_v39 }
  0xb6   :  { %v91_v43 = vsel %vm90_vm3, %v77_v42, %v70_v41 }
  0xb7   :  { %195 = vmatmul.mubr.msk.f32.vlgmr.msra.gmra.mrb[0].mxu0 %vm63_vm0, %v91_v43 }
 0x18a   :  { %v160_v44 = vpop.f32.mrb[0].mxu0 }
 0x18b   :  { %v162_v45 = vpop.f32.mrb[1].mxu0 }
 0x18c   :  { %v167_v46 = vcombine.low %v160_v44, %v162_v45 }
 0x18e   :  { %196 = vst.sshfl [vmem:[#allocation7] sm:$0x33 pattern:$0x76325410] %v167_v46 }
 0x18f   :  { %266 = shalt.err (!%p263_p6)
}
 0x190   :  { %s267_s10 = scalar_lea.hbm %s352_s2, 64 }
 0x191   :  { %p268_p7 = scmp.ne.s32.totalorder %s352_s2, %s267_s10  ;;  %p271_p8 = scmp.lt.u32.totalorder %s267_s10, %s352_s2 }
 0x193   :  { %p273_p9 = pnand %p271_p8, %p268_p7 }
 0x195   :  { %276 = shalt.err (!%p273_p9)
}
 0x196   :  { %186 = dma.vmem_to_hbm [thread:$0]  %s184_s6, 64, %s352_s2, [#allocation4]  }
 0x197   :  { %281 = dma.done.wait [#allocation4], 64  }
 0x198   :  { %282 = vsyncadd [#allocation4], 4294967232 }
 0x199   :  { %190 = vsyncpa [#allocation3], 1 }
 0x19a   :  { %191 = vsyncpa [#allocation6], 1 }
 0x19b   :  { %192 = vsyncpa [#allocation4], 1 }

</bundles_post_ra>
